<compile_context>
chip_gen: v7x
topology: tpu7x:2x2x1
jax: 0.10.0
libtpu: 0.0.40
codegen_flags: <defaults>
</compile_context>

<pallas_src>
import functools

import jax
import jax.numpy as jnp
from jax.experimental import pallas as pl
from jax.experimental.pallas import tpu as pltpu

# --- module hyper-parameters (BalancedSamplingLoss(base_loss='focal')) ---
NUM_CLASSES = 3
GAMMA = 3.0                       # integer-valued; implemented as a cube below
SMOOTH = 1e-6
DICE_WEIGHT = 0.8
FOCAL_WEIGHT = 0.2
ALPHA = (0.02, 12.0, 18.0)        # deterministic "parameters" from __init__
MAX_TILE_R = 2048                 # rows of 128 lanes per grid step (262144 px)

assert GAMMA == 3.0, "focal term is hard-coded as a cube; update if gamma changes"


def _round_up(x, m):
    return -(-x // m) * m


def _partials_kernel(tile_r, masked, logits_ref, tgt_ref, out_ref):
    """One (batch b, row-tile r) grid step; accumulates per-b partial sums.

    out_ref has shape (10, 8, 128):
      [0]          sum of per-pixel focal terms
      [1 .. 3]     per-class sum(p * onehot)   (dice intersection)
      [4 .. 6]     per-class sum(p)            (dice union, prediction part)
      [7 .. 9]     per-class sum(onehot)       (dice union, target part)
    """
    r = pl.program_id(1)

    @pl.when(r == 0)
    def _():
        out_ref[...] = jnp.zeros_like(out_ref)

    t = tgt_ref[...]                                       # (tile_r, 128) i32
    x = [logits_ref[c].astype(jnp.float32) for c in range(NUM_CLASSES)]

    if masked:
        valid_b = t >= 0                                   # padded pixels = -1
        oh = [jnp.logical_and(t == c, valid_b).astype(jnp.float32)
              for c in range(NUM_CLASSES)]
    else:
        valid_b = None
        oh = [(t == c).astype(jnp.float32) for c in range(NUM_CLASSES)]

    # per-pixel softmax over the class axis, fully unrolled (C == 3)
    m = x[0]
    for c in range(1, NUM_CLASSES):
        m = jnp.maximum(m, x[c])
    ex = [jnp.exp(xc - m) for xc in x]
    se = ex[0]
    for c in range(1, NUM_CLASSES):
        se = se + ex[c]
    inv_se = 1.0 / se
    p = [ec * inv_se for ec in ex]                         # softmax probabilities

    # p * onehot computed once, reused for pt gather and dice intersection
    poh = [p[c] * oh[c] for c in range(NUM_CLASSES)]

    # focal loss: pt = p[target], ce = -log(pt), alpha_t = alpha[target]
    pt = poh[0]
    alpha_t = ALPHA[0] * oh[0]
    for c in range(1, NUM_CLASSES):
        pt = pt + poh[c]
        alpha_t = alpha_t + ALPHA[c] * oh[c]
    if masked:
        pt = jnp.where(valid_b, pt, 1.0)                   # padding -> ce = 0
    ce = -jnp.log(pt)
    omp = 1.0 - pt
    focal = alpha_t * (omp * omp * omp) * ce               # (1 - pt) ** 3, gamma = 3

    def psum8(v):
        # (tile_r, 128) -> (8, 128) partial sums: free sublane-group reshape,
        # VALU adds only.  Final sublane + lane reduce happens in the wrapper.
        return jnp.sum(v.reshape(tile_r // 8, 8, 128), axis=0)

    vf = valid_b.astype(jnp.float32) if masked else None
    out_ref[0] += psum8(focal)
    for c in range(NUM_CLASSES):
        out_ref[1 + c] += psum8(poh[c])
        pc = p[c] * vf if masked else p[c]
        out_ref[1 + NUM_CLASSES + c] += psum8(pc)
        out_ref[1 + 2 * NUM_CLASSES + c] += psum8(oh[c])


def improved_dice_focal_loss(logits_nchw, targets_nhw, *, max_tile_r=MAX_TILE_R):
    """ImprovedDiceFocalLoss(inputs, targets) for NCHW logits, (B,H,W) labels."""
    B, C, H, W = logits_nchw.shape
    assert C == NUM_CLASSES
    HW = H * W
    P = B * HW

    # Sublane quantum for the logits dtype (f32: 8, bf16: 16, int8/fp8: 32).
    itemsize = jnp.dtype(logits_nchw.dtype).itemsize
    q = max(8, 32 // max(itemsize, 1))
    max_tile_r = _round_up(max(int(max_tile_r), q), q)

    # Pixel-axis layout: HW -> (rows_pad, 128).  The row range is split into
    # n_tiles near-equal tiles so padding waste is bounded by a few rows and
    # common aligned sizes need no pad at all.
    rows = -(-HW // 128)
    rows_q = _round_up(rows, q)
    n_tiles = -(-rows_q // max_tile_r)
    tile_r = _round_up(-(-rows_q // n_tiles), q)
    rows_pad = n_tiles * tile_r
    hw_pad = rows_pad * 128

    # Logits keep their input dtype (no wrapper-side f32 upcast); the kernel
    # upcasts per tile.  No NCHW transpose is needed: (B,C,H,W)->(B,C,HW) is free.
    logits = logits_nchw.reshape(B, C, HW)
    tgt = targets_nhw.astype(jnp.int32).reshape(B, HW)
    masked = hw_pad != HW
    if masked:
        # TODO(synk): this pad materializes one copy; it only triggers for
        # pixel counts that are not already lane/row aligned.  An in-kernel
        # ragged-row mask would avoid it entirely.
        logits = jnp.pad(logits, ((0, 0), (0, 0), (0, hw_pad - HW)))
        tgt = jnp.pad(tgt, ((0, 0), (0, hw_pad - HW)), constant_values=-1)
    logits = logits.reshape(B, C, rows_pad, 128)
    tgt = tgt.reshape(B, rows_pad, 128)

    n_stats = 1 + 3 * NUM_CLASSES
    kernel = functools.partial(_partials_kernel, tile_r, masked)

    partials = pl.pallas_call(
        kernel,
        out_shape=jax.ShapeDtypeStruct((B, n_stats, 8, 128), jnp.float32),
        grid_spec=pltpu.PrefetchScalarGridSpec(
            num_scalar_prefetch=0,
            grid=(B, n_tiles),
            in_specs=[
                pl.BlockSpec((pl.Squeezed(), C, tile_r, 128),
                             lambda b, r: (b, 0, r, 0)),        # logits tile
                pl.BlockSpec((pl.Squeezed(), tile_r, 128),
                             lambda b, r: (b, r, 0)),           # target tile
            ],
            # Per-b resident accumulator block: init at r==0, written back when
            # b advances.  Distinct blocks per b -> safe under megacore split.
            out_specs=pl.BlockSpec((pl.Squeezed(), n_stats, 8, 128),
                                   lambda b, r: (b, 0, 0, 0)),
        ),
        compiler_params=pltpu.CompilerParams(
            dimension_semantics=("parallel", "arbitrary")),
    )(logits, tgt)

    # Tiny final reduction + focal/dice combine (B*10*1024 floats) in JAX.
    sums = jnp.sum(partials, axis=(0, 2, 3))                    # (10,)
    focal_sum = sums[0]
    inter = sums[1:1 + NUM_CLASSES]
    p_sum = sums[1 + NUM_CLASSES:1 + 2 * NUM_CLASSES]
    t_sum = sums[1 + 2 * NUM_CLASSES:1 + 3 * NUM_CLASSES]

    alpha = jnp.array(ALPHA, dtype=jnp.float32)
    focal = focal_sum / jnp.float32(P)
    union = p_sum + t_sum
    dice = 1.0 - (2.0 * inter + SMOOTH) / (union + SMOOTH)
    dice = jnp.where(union == 0.0, 0.0, dice)
    dice_mean = jnp.mean(alpha * dice)
    return FOCAL_WEIGHT * focal + DICE_WEIGHT * dice_mean


def balanced_sampling_loss(logits_nchw, targets_nhw):
    """BalancedSamplingLoss.forward — full-tensor criterion path (see TODO)."""
    return improved_dice_focal_loss(logits_nchw, targets_nhw)


def _reference_loss(logits_nchw, targets_nhw):
    """Pure-JAX reference of ImprovedDiceFocalLoss for validation."""
    logp = jax.nn.log_softmax(logits_nchw.astype(jnp.float32), axis=1)
    p = jnp.exp(logp)
    onehot = jax.nn.one_hot(targets_nhw, NUM_CLASSES, axis=1, dtype=jnp.float32)
    ce = -jnp.sum(onehot * logp, axis=1)
    pt = jnp.exp(-ce)
    alpha = jnp.array(ALPHA, dtype=jnp.float32)
    alpha_t = alpha[targets_nhw]
    focal = jnp.mean(alpha_t * (1.0 - pt) ** GAMMA * ce)
    inter = jnp.sum(p * onehot, axis=(0, 2, 3))
    union = jnp.sum(p, axis=(0, 2, 3)) + jnp.sum(onehot, axis=(0, 2, 3))
    dice = 1.0 - (2.0 * inter + SMOOTH) / (union + SMOOTH)
    dice = jnp.where(union == 0.0, 0.0, dice)
    dice_mean = jnp.mean(alpha * dice)
    return FOCAL_WEIGHT * focal + DICE_WEIGHT * dice_mean


if __name__ == "__main__":
    key = jax.random.PRNGKey(0)
    k_logits, k_tgt, k_logits2, k_tgt2 = jax.random.split(key, 4)

    # 1) Small shape implied by the module (B=2, C=3, 16x16 image) with mixed
    #    class labels; exercises the lane-padding (masked) path.
    B, H, W = 2, 16, 16
    logits = jax.random.normal(k_logits, (B, NUM_CLASSES, H, W), dtype=jnp.float32)
    targets = jax.random.randint(k_tgt, (B, H, W), 0, NUM_CLASSES, dtype=jnp.int32)
    loss = jax.block_until_ready(improved_dice_focal_loss(logits, targets))
    ref = jax.block_until_ready(_reference_loss(logits, targets))
    assert jnp.isfinite(loss), "kernel produced non-finite loss"
    assert jnp.allclose(loss, ref, rtol=1e-5, atol=1e-5), (loss, ref)

    # 2) All-background targets: exactly the input regime in which the PyTorch
    #    forward takes the fallback `self.criterion(inputs, targets)` path
    #    that this kernel implements.
    targets_bg = jnp.zeros((B, H, W), dtype=jnp.int32)
    loss_bg = jax.block_until_ready(balanced_sampling_loss(logits, targets_bg))
    ref_bg = jax.block_until_ready(_reference_loss(logits, targets_bg))
    assert jnp.isfinite(loss_bg), "kernel produced non-finite loss"
    assert jnp.allclose(loss_bg, ref_bg, rtol=1e-5, atol=1e-5), (loss_bg, ref_bg)

    # 3) 64x64 image (HW = 4096 -> 32 aligned rows): pad-free path; a small
    #    max_tile_r forces multi-tile accumulation over the "arbitrary" axis.
    logits2 = jax.random.normal(k_logits2, (B, NUM_CLASSES, 64, 64), dtype=jnp.float32)
    targets2 = jax.random.randint(k_tgt2, (B, 64, 64), 0, NUM_CLASSES, dtype=jnp.int32)
    loss2 = jax.block_until_ready(
        improved_dice_focal_loss(logits2, targets2, max_tile_r=8))
    ref2 = jax.block_until_ready(_reference_loss(logits2, targets2))
    assert jnp.isfinite(loss2), "kernel produced non-finite loss"
    assert jnp.allclose(loss2, ref2, rtol=1e-5, atol=1e-5), (loss2, ref2)

    print("KERNEL_OK")
</pallas_src>

<mosaic_0001>
module attributes {stable_mosaic.version = 11 : i64} {
  func.func @_partials_kernel(%arg0: i32, %arg1: i32, %arg2: memref<1x3x8x128xf32, #tpu.memory_space<vmem>>, %arg3: memref<1x8x128xi32, #tpu.memory_space<vmem>>, %arg4: memref<1x10x8x128xf32, #tpu.memory_space<vmem>>) attributes {dimension_semantics = [#tpu.dimension_semantics<parallel>, #tpu.dimension_semantics<arbitrary>], iteration_bounds = array<i64: 2, 1>, scalar_prefetch = 0 : i64, scratch_operands = 0 : i64, tpu.core_type = #tpu.core_type<tc>, window_params = [{transform_indices = @transform_0, window_bounds = array<i64: 1, 3, 8, 128>}, {transform_indices = @transform_1, window_bounds = array<i64: 1, 8, 128>}, {transform_indices = @transform_2, window_bounds = array<i64: 1, 10, 8, 128>}]} {
    %c0_i32 = arith.constant 0 : i32
    %0 = arith.cmpi eq, %arg1, %c0_i32 : i32
    %1 = arith.extui %0 : i1 to i32
    %c0_i32_0 = arith.constant 0 : i32
    %2 = arith.cmpi ne, %1, %c0_i32_0 : i32
    scf.if %2 {
      %cst_104 = arith.constant 0.000000e+00 : f32
      %152 = vector.broadcast %cst_104 : f32 to vector<10x8x128xf32>
      %c0_105 = arith.constant 0 : index
      %c0_106 = arith.constant 0 : index
      %c0_107 = arith.constant 0 : index
      %c0_108 = arith.constant 0 : index
      %153 = vector.load %arg4[%c0_105, %c0_106, %c0_107, %c0_108] : memref<1x10x8x128xf32, #tpu.memory_space<vmem>>, vector<1x10x8x128xf32>
      %154 = vector.shape_cast %153 : vector<1x10x8x128xf32> to vector<10x8x128xf32>
      %155 = vector.shape_cast %152 : vector<10x8x128xf32> to vector<1x10x8x128xf32>
      tpu.vector_store %arg4[%c0_105, %c0_106, %c0_107, %c0_108], %155 {strides = array<i32>} : memref<1x10x8x128xf32, #tpu.memory_space<vmem>>, vector<1x10x8x128xf32>,
    } else {
    }
    %c0 = arith.constant 0 : index
    %c0_1 = arith.constant 0 : index
    %c0_2 = arith.constant 0 : index
    %3 = vector.load %arg3[%c0, %c0_1, %c0_2] : memref<1x8x128xi32, #tpu.memory_space<vmem>>, vector<1x8x128xi32>
    %4 = vector.shape_cast %3 : vector<1x8x128xi32> to vector<8x128xi32>
    %c0_3 = arith.constant 0 : index
    %c0_4 = arith.constant 0 : index
    %c0_5 = arith.constant 0 : index
    %c0_6 = arith.constant 0 : index
    %5 = vector.load %arg2[%c0_3, %c0_4, %c0_5, %c0_6] : memref<1x3x8x128xf32, #tpu.memory_space<vmem>>, vector<1x1x8x128xf32>
    %6 = vector.shape_cast %5 : vector<1x1x8x128xf32> to vector<8x128xf32>
    %c0_7 = arith.constant 0 : index
    %c1 = arith.constant 1 : index
    %c0_8 = arith.constant 0 : index
    %c0_9 = arith.constant 0 : index
    %7 = vector.load %arg2[%c0_7, %c1, %c0_8, %c0_9] : memref<1x3x8x128xf32, #tpu.memory_space<vmem>>, vector<1x1x8x128xf32>
    %8 = vector.shape_cast %7 : vector<1x1x8x128xf32> to vector<8x128xf32>
    %c0_10 = arith.constant 0 : index
    %c2 = arith.constant 2 : index
    %c0_11 = arith.constant 0 : index
    %c0_12 = arith.constant 0 : index
    %9 = vector.load %arg2[%c0_10, %c2, %c0_11, %c0_12] : memref<1x3x8x128xf32, #tpu.memory_space<vmem>>, vector<1x1x8x128xf32>
    %10 = vector.shape_cast %9 : vector<1x1x8x128xf32> to vector<8x128xf32>
    %c0_i32_13 = arith.constant 0 : i32
    %11 = vector.broadcast %c0_i32_13 : i32 to vector<8x128xi32>
    %12 = arith.cmpi sge, %4, %11 : vector<8x128xi32>
    %c0_i32_14 = arith.constant 0 : i32
    %13 = vector.broadcast %c0_i32_14 : i32 to vector<8x128xi32>
    %14 = arith.cmpi eq, %4, %13 : vector<8x128xi32>
    %15 = arith.andi %14, %12 : vector<8x128xi1>
    %16 = arith.extui %15 : vector<8x128xi1> to vector<8x128xi32>
    %17 = arith.sitofp %16 : vector<8x128xi32> to vector<8x128xf32>
    %c1_i32 = arith.constant 1 : i32
    %18 = vector.broadcast %c1_i32 : i32 to vector<8x128xi32>
    %19 = arith.cmpi eq, %4, %18 : vector<8x128xi32>
    %20 = arith.andi %19, %12 : vector<8x128xi1>
    %21 = arith.extui %20 : vector<8x128xi1> to vector<8x128xi32>
    %22 = arith.sitofp %21 : vector<8x128xi32> to vector<8x128xf32>
    %c2_i32 = arith.constant 2 : i32
    %23 = vector.broadcast %c2_i32 : i32 to vector<8x128xi32>
    %24 = arith.cmpi eq, %4, %23 : vector<8x128xi32>
    %25 = arith.andi %24, %12 : vector<8x128xi1>
    %26 = arith.extui %25 : vector<8x128xi1> to vector<8x128xi32>
    %27 = arith.sitofp %26 : vector<8x128xi32> to vector<8x128xf32>
    %28 = arith.maximumf %6, %8 : vector<8x128xf32>
    %29 = arith.maximumf %28, %10 : vector<8x128xf32>
    %30 = arith.subf %6, %29 : vector<8x128xf32>
    %31 = math.exp %30 : vector<8x128xf32>
    %32 = arith.subf %8, %29 : vector<8x128xf32>
    %33 = math.exp %32 : vector<8x128xf32>
    %34 = arith.subf %10, %29 : vector<8x128xf32>
    %35 = math.exp %34 : vector<8x128xf32>
    %36 = arith.addf %31, %33 : vector<8x128xf32>
    %37 = arith.addf %36, %35 : vector<8x128xf32>
    %cst = arith.constant 1.000000e+00 : f32
    %38 = vector.broadcast %cst : f32 to vector<8x128xf32>
    %39 = arith.divf %38, %37 : vector<8x128xf32>
    %40 = arith.mulf %31, %39 : vector<8x128xf32>
    %41 = arith.mulf %33, %39 : vector<8x128xf32>
    %42 = arith.mulf %35, %39 : vector<8x128xf32>
    %43 = arith.mulf %40, %17 : vector<8x128xf32>
    %44 = arith.mulf %41, %22 : vector<8x128xf32>
    %45 = arith.mulf %42, %27 : vector<8x128xf32>
    %cst_15 = arith.constant 2.000000e-02 : f32
    %46 = vector.broadcast %cst_15 : f32 to vector<8x128xf32>
    %47 = arith.mulf %46, %17 : vector<8x128xf32>
    %48 = arith.addf %43, %44 : vector<8x128xf32>
    %cst_16 = arith.constant 1.200000e+01 : f32
    %49 = vector.broadcast %cst_16 : f32 to vector<8x128xf32>
    %50 = arith.mulf %49, %22 : vector<8x128xf32>
    %51 = arith.addf %47, %50 : vector<8x128xf32>
    %52 = arith.addf %48, %45 : vector<8x128xf32>
    %cst_17 = arith.constant 1.800000e+01 : f32
    %53 = vector.broadcast %cst_17 : f32 to vector<8x128xf32>
    %54 = arith.mulf %53, %27 : vector<8x128xf32>
    %55 = arith.addf %51, %54 : vector<8x128xf32>
    %cst_18 = arith.constant 1.000000e+00 : f32
    %56 = vector.broadcast %cst_18 : f32 to vector<8x128xf32>
    %57 = arith.select %12, %52, %56 : vector<8x128xi1>, vector<8x128xf32>
    %58 = math.log %57 : vector<8x128xf32>
    %cst_19 = arith.constant 0.000000e+00 : f32
    %59 = vector.broadcast %cst_19 : f32 to vector<8x128xf32>
    %60 = arith.subf %59, %58 : vector<8x128xf32>
    %cst_20 = arith.constant 1.000000e+00 : f32
    %61 = vector.broadcast %cst_20 : f32 to vector<8x128xf32>
    %62 = arith.subf %61, %57 : vector<8x128xf32>
    %63 = arith.mulf %62, %62 : vector<8x128xf32>
    %64 = arith.mulf %63, %62 : vector<8x128xf32>
    %65 = arith.mulf %55, %64 : vector<8x128xf32>
    %66 = arith.mulf %65, %60 : vector<8x128xf32>
    %67 = arith.extui %12 : vector<8x128xi1> to vector<8x128xi32>
    %68 = arith.sitofp %67 : vector<8x128xi32> to vector<8x128xf32>
    %c0_21 = arith.constant 0 : index
    %c0_22 = arith.constant 0 : index
    %c0_23 = arith.constant 0 : index
    %c0_24 = arith.constant 0 : index
    %69 = vector.load %arg4[%c0_21, %c0_22, %c0_23, %c0_24] : memref<1x10x8x128xf32, #tpu.memory_space<vmem>>, vector<1x1x8x128xf32>
    %70 = vector.shape_cast %69 : vector<1x1x8x128xf32> to vector<8x128xf32>
    %71 = vector.shape_cast %66 : vector<8x128xf32> to vector<1x8x128xf32>
    %cst_25 = arith.constant dense<0.000000e+00> : vector<8x128xf32>
    %72 = vector.multi_reduction <add>, %71, %cst_25 [0] : vector<1x8x128xf32> to vector<8x128xf32>
    %73 = arith.addf %70, %72 : vector<8x128xf32>
    %c0_26 = arith.constant 0 : index
    %c0_27 = arith.constant 0 : index
    %c0_28 = arith.constant 0 : index
    %c0_29 = arith.constant 0 : index
    %74 = vector.load %arg4[%c0_26, %c0_27, %c0_28, %c0_29] : memref<1x10x8x128xf32, #tpu.memory_space<vmem>>, vector<1x1x8x128xf32>
    %75 = vector.shape_cast %74 : vector<1x1x8x128xf32> to vector<8x128xf32>
    %76 = vector.shape_cast %73 : vector<8x128xf32> to vector<1x1x8x128xf32>
    tpu.vector_store %arg4[%c0_26, %c0_27, %c0_28, %c0_29], %76 {strides = array<i32>} : memref<1x10x8x128xf32, #tpu.memory_space<vmem>>, vector<1x1x8x128xf32>,
    %c0_30 = arith.constant 0 : index
    %c1_31 = arith.constant 1 : index
    %c0_32 = arith.constant 0 : index
    %c0_33 = arith.constant 0 : index
    %77 = vector.load %arg4[%c0_30, %c1_31, %c0_32, %c0_33] : memref<1x10x8x128xf32, #tpu.memory_space<vmem>>, vector<1x1x8x128xf32>
    %78 = vector.shape_cast %77 : vector<1x1x8x128xf32> to vector<8x128xf32>
    %79 = vector.shape_cast %43 : vector<8x128xf32> to vector<1x8x128xf32>
    %cst_34 = arith.constant dense<0.000000e+00> : vector<8x128xf32>
    %80 = vector.multi_reduction <add>, %79, %cst_34 [0] : vector<1x8x128xf32> to vector<8x128xf32>
    %81 = arith.addf %78, %80 : vector<8x128xf32>
    %c0_35 = arith.constant 0 : index
    %c1_36 = arith.constant 1 : index
    %c0_37 = arith.constant 0 : index
    %c0_38 = arith.constant 0 : index
    %82 = vector.load %arg4[%c0_35, %c1_36, %c0_37, %c0_38] : memref<1x10x8x128xf32, #tpu.memory_space<vmem>>, vector<1x1x8x128xf32>
    %83 = vector.shape_cast %82 : vector<1x1x8x128xf32> to vector<8x128xf32>
    %84 = vector.shape_cast %81 : vector<8x128xf32> to vector<1x1x8x128xf32>
    tpu.vector_store %arg4[%c0_35, %c1_36, %c0_37, %c0_38], %84 {strides = array<i32>} : memref<1x10x8x128xf32, #tpu.memory_space<vmem>>, vector<1x1x8x128xf32>,
    %85 = arith.mulf %40, %68 : vector<8x128xf32>
    %c0_39 = arith.constant 0 : index
    %c4 = arith.constant 4 : index
    %c0_40 = arith.constant 0 : index
    %c0_41 = arith.constant 0 : index
    %86 = vector.load %arg4[%c0_39, %c4, %c0_40, %c0_41] : memref<1x10x8x128xf32, #tpu.memory_space<vmem>>, vector<1x1x8x128xf32>
    %87 = vector.shape_cast %86 : vector<1x1x8x128xf32> to vector<8x128xf32>
    %88 = vector.shape_cast %85 : vector<8x128xf32> to vector<1x8x128xf32>
    %cst_42 = arith.constant dense<0.000000e+00> : vector<8x128xf32>
    %89 = vector.multi_reduction <add>, %88, %cst_42 [0] : vector<1x8x128xf32> to vector<8x128xf32>
    %90 = arith.addf %87, %89 : vector<8x128xf32>
    %c0_43 = arith.constant 0 : index
    %c4_44 = arith.constant 4 : index
    %c0_45 = arith.constant 0 : index
    %c0_46 = arith.constant 0 : index
    %91 = vector.load %arg4[%c0_43, %c4_44, %c0_45, %c0_46] : memref<1x10x8x128xf32, #tpu.memory_space<vmem>>, vector<1x1x8x128xf32>
    %92 = vector.shape_cast %91 : vector<1x1x8x128xf32> to vector<8x128xf32>
    %93 = vector.shape_cast %90 : vector<8x128xf32> to vector<1x1x8x128xf32>
    tpu.vector_store %arg4[%c0_43, %c4_44, %c0_45, %c0_46], %93 {strides = array<i32>} : memref<1x10x8x128xf32, #tpu.memory_space<vmem>>, vector<1x1x8x128xf32>,
    %c0_47 = arith.constant 0 : index
    %c7 = arith.constant 7 : index
    %c0_48 = arith.constant 0 : index
    %c0_49 = arith.constant 0 : index
    %94 = vector.load %arg4[%c0_47, %c7, %c0_48, %c0_49] : memref<1x10x8x128xf32, #tpu.memory_space<vmem>>, vector<1x1x8x128xf32>
    %95 = vector.shape_cast %94 : vector<1x1x8x128xf32> to vector<8x128xf32>
    %96 = vector.shape_cast %17 : vector<8x128xf32> to vector<1x8x128xf32>
    %cst_50 = arith.constant dense<0.000000e+00> : vector<8x128xf32>
    %97 = vector.multi_reduction <add>, %96, %cst_50 [0] : vector<1x8x128xf32> to vector<8x128xf32>
    %98 = arith.addf %95, %97 : vector<8x128xf32>
    %c0_51 = arith.constant 0 : index
    %c7_52 = arith.constant 7 : index
    %c0_53 = arith.constant 0 : index
    %c0_54 = arith.constant 0 : index
    %99 = vector.load %arg4[%c0_51, %c7_52, %c0_53, %c0_54] : memref<1x10x8x128xf32, #tpu.memory_space<vmem>>, vector<1x1x8x128xf32>
    %100 = vector.shape_cast %99 : vector<1x1x8x128xf32> to vector<8x128xf32>
    %101 = vector.shape_cast %98 : vector<8x128xf32> to vector<1x1x8x128xf32>
    tpu.vector_store %arg4[%c0_51, %c7_52, %c0_53, %c0_54], %101 {strides = array<i32>} : memref<1x10x8x128xf32, #tpu.memory_space<vmem>>, vector<1x1x8x128xf32>,
    %c0_55 = arith.constant 0 : index
    %c2_56 = arith.constant 2 : index
    %c0_57 = arith.constant 0 : index
    %c0_58 = arith.constant 0 : index
    %102 = vector.load %arg4[%c0_55, %c2_56, %c0_57, %c0_58] : memref<1x10x8x128xf32, #tpu.memory_space<vmem>>, vector<1x1x8x128xf32>
    %103 = vector.shape_cast %102 : vector<1x1x8x128xf32> to vector<8x128xf32>
    %104 = vector.shape_cast %44 : vector<8x128xf32> to vector<1x8x128xf32>
    %cst_59 = arith.constant dense<0.000000e+00> : vector<8x128xf32>
    %105 = vector.multi_reduction <add>, %104, %cst_59 [0] : vector<1x8x128xf32> to vector<8x128xf32>
    %106 = arith.addf %103, %105 : vector<8x128xf32>
    %c0_60 = arith.constant 0 : index
    %c2_61 = arith.constant 2 : index
    %c0_62 = arith.constant 0 : index
    %c0_63 = arith.constant 0 : index
    %107 = vector.load %arg4[%c0_60, %c2_61, %c0_62, %c0_63] : memref<1x10x8x128xf32, #tpu.memory_space<vmem>>, vector<1x1x8x128xf32>
    %108 = vector.shape_cast %107 : vector<1x1x8x128xf32> to vector<8x128xf32>
    %109 = vector.shape_cast %106 : vector<8x128xf32> to vector<1x1x8x128xf32>
    tpu.vector_store %arg4[%c0_60, %c2_61, %c0_62, %c0_63], %109 {strides = array<i32>} : memref<1x10x8x128xf32, #tpu.memory_space<vmem>>, vector<1x1x8x128xf32>,
    %110 = arith.mulf %41, %68 : vector<8x128xf32>
    %c0_64 = arith.constant 0 : index
    %c5 = arith.constant 5 : index
    %c0_65 = arith.constant 0 : index
    %c0_66 = arith.constant 0 : index
    %111 = vector.load %arg4[%c0_64, %c5, %c0_65, %c0_66] : memref<1x10x8x128xf32, #tpu.memory_space<vmem>>, vector<1x1x8x128xf32>
    %112 = vector.shape_cast %111 : vector<1x1x8x128xf32> to vector<8x128xf32>
    %113 = vector.shape_cast %110 : vector<8x128xf32> to vector<1x8x128xf32>
    %cst_67 = arith.constant dense<0.000000e+00> : vector<8x128xf32>
    %114 = vector.multi_reduction <add>, %113, %cst_67 [0] : vector<1x8x128xf32> to vector<8x128xf32>
    %115 = arith.addf %112, %114 : vector<8x128xf32>
    %c0_68 = arith.constant 0 : index
    %c5_69 = arith.constant 5 : index
    %c0_70 = arith.constant 0 : index
    %c0_71 = arith.constant 0 : index
    %116 = vector.load %arg4[%c0_68, %c5_69, %c0_70, %c0_71] : memref<1x10x8x128xf32, #tpu.memory_space<vmem>>, vector<1x1x8x128xf32>
    %117 = vector.shape_cast %116 : vector<1x1x8x128xf32> to vector<8x128xf32>
    %118 = vector.shape_cast %115 : vector<8x128xf32> to vector<1x1x8x128xf32>
    tpu.vector_store %arg4[%c0_68, %c5_69, %c0_70, %c0_71], %118 {strides = array<i32>} : memref<1x10x8x128xf32, #tpu.memory_space<vmem>>, vector<1x1x8x128xf32>,
    %c0_72 = arith.constant 0 : index
    %c8 = arith.constant 8 : index
    %c0_73 = arith.constant 0 : index
    %c0_74 = arith.constant 0 : index
    %119 = vector.load %arg4[%c0_72, %c8, %c0_73, %c0_74] : memref<1x10x8x128xf32, #tpu.memory_space<vmem>>, vector<1x1x8x128xf32>
    %120 = vector.shape_cast %119 : vector<1x1x8x128xf32> to vector<8x128xf32>
    %121 = vector.shape_cast %22 : vector<8x128xf32> to vector<1x8x128xf32>
    %cst_75 = arith.constant dense<0.000000e+00> : vector<8x128xf32>
    %122 = vector.multi_reduction <add>, %121, %cst_75 [0] : vector<1x8x128xf32> to vector<8x128xf32>
    %123 = arith.addf %120, %122 : vector<8x128xf32>
    %c0_76 = arith.constant 0 : index
    %c8_77 = arith.constant 8 : index
    %c0_78 = arith.constant 0 : index
    %c0_79 = arith.constant 0 : index
    %124 = vector.load %arg4[%c0_76, %c8_77, %c0_78, %c0_79] : memref<1x10x8x128xf32, #tpu.memory_space<vmem>>, vector<1x1x8x128xf32>
    %125 = vector.shape_cast %124 : vector<1x1x8x128xf32> to vector<8x128xf32>
    %126 = vector.shape_cast %123 : vector<8x128xf32> to vector<1x1x8x128xf32>
    tpu.vector_store %arg4[%c0_76, %c8_77, %c0_78, %c0_79], %126 {strides = array<i32>} : memref<1x10x8x128xf32, #tpu.memory_space<vmem>>, vector<1x1x8x128xf32>,
    %c0_80 = arith.constant 0 : index
    %c3 = arith.constant 3 : index
    %c0_81 = arith.constant 0 : index
    %c0_82 = arith.constant 0 : index
    %127 = vector.load %arg4[%c0_80, %c3, %c0_81, %c0_82] : memref<1x10x8x128xf32, #tpu.memory_space<vmem>>, vector<1x1x8x128xf32>
    %128 = vector.shape_cast %127 : vector<1x1x8x128xf32> to vector<8x128xf32>
    %129 = vector.shape_cast %45 : vector<8x128xf32> to vector<1x8x128xf32>
    %cst_83 = arith.constant dense<0.000000e+00> : vector<8x128xf32>
    %130 = vector.multi_reduction <add>, %129, %cst_83 [0] : vector<1x8x128xf32> to vector<8x128xf32>
    %131 = arith.addf %128, %130 : vector<8x128xf32>
    %c0_84 = arith.constant 0 : index
    %c3_85 = arith.constant 3 : index
    %c0_86 = arith.constant 0 : index
    %c0_87 = arith.constant 0 : index
    %132 = vector.load %arg4[%c0_84, %c3_85, %c0_86, %c0_87] : memref<1x10x8x128xf32, #tpu.memory_space<vmem>>, vector<1x1x8x128xf32>
    %133 = vector.shape_cast %132 : vector<1x1x8x128xf32> to vector<8x128xf32>
    %134 = vector.shape_cast %131 : vector<8x128xf32> to vector<1x1x8x128xf32>
    tpu.vector_store %arg4[%c0_84, %c3_85, %c0_86, %c0_87], %134 {strides = array<i32>} : memref<1x10x8x128xf32, #tpu.memory_space<vmem>>, vector<1x1x8x128xf32>,
    %135 = arith.mulf %42, %68 : vector<8x128xf32>
    %c0_88 = arith.constant 0 : index
    %c6 = arith.constant 6 : index
    %c0_89 = arith.constant 0 : index
    %c0_90 = arith.constant 0 : index
    %136 = vector.load %arg4[%c0_88, %c6, %c0_89, %c0_90] : memref<1x10x8x128xf32, #tpu.memory_space<vmem>>, vector<1x1x8x128xf32>
    %137 = vector.shape_cast %136 : vector<1x1x8x128xf32> to vector<8x128xf32>
    %138 = vector.shape_cast %135 : vector<8x128xf32> to vector<1x8x128xf32>
    %cst_91 = arith.constant dense<0.000000e+00> : vector<8x128xf32>
    %139 = vector.multi_reduction <add>, %138, %cst_91 [0] : vector<1x8x128xf32> to vector<8x128xf32>
    %140 = arith.addf %137, %139 : vector<8x128xf32>
    %c0_92 = arith.constant 0 : index
    %c6_93 = arith.constant 6 : index
    %c0_94 = arith.constant 0 : index
    %c0_95 = arith.constant 0 : index
    %141 = vector.load %arg4[%c0_92, %c6_93, %c0_94, %c0_95] : memref<1x10x8x128xf32, #tpu.memory_space<vmem>>, vector<1x1x8x128xf32>
    %142 = vector.shape_cast %141 : vector<1x1x8x128xf32> to vector<8x128xf32>
    %143 = vector.shape_cast %140 : vector<8x128xf32> to vector<1x1x8x128xf32>
    tpu.vector_store %arg4[%c0_92, %c6_93, %c0_94, %c0_95], %143 {strides = array<i32>} : memref<1x10x8x128xf32, #tpu.memory_space<vmem>>, vector<1x1x8x128xf32>,
    %c0_96 = arith.constant 0 : index
    %c9 = arith.constant 9 : index
    %c0_97 = arith.constant 0 : index
    %c0_98 = arith.constant 0 : index
    %144 = vector.load %arg4[%c0_96, %c9, %c0_97, %c0_98] : memref<1x10x8x128xf32, #tpu.memory_space<vmem>>, vector<1x1x8x128xf32>
    %145 = vector.shape_cast %144 : vector<1x1x8x128xf32> to vector<8x128xf32>
    %146 = vector.shape_cast %27 : vector<8x128xf32> to vector<1x8x128xf32>
    %cst_99 = arith.constant dense<0.000000e+00> : vector<8x128xf32>
    %147 = vector.multi_reduction <add>, %146, %cst_99 [0] : vector<1x8x128xf32> to vector<8x128xf32>
    %148 = arith.addf %145, %147 : vector<8x128xf32>
    %c0_100 = arith.constant 0 : index
    %c9_101 = arith.constant 9 : index
    %c0_102 = arith.constant 0 : index
    %c0_103 = arith.constant 0 : index
    %149 = vector.load %arg4[%c0_100, %c9_101, %c0_102, %c0_103] : memref<1x10x8x128xf32, #tpu.memory_space<vmem>>, vector<1x1x8x128xf32>
    %150 = vector.shape_cast %149 : vector<1x1x8x128xf32> to vector<8x128xf32>
    %151 = vector.shape_cast %148 : vector<8x128xf32> to vector<1x1x8x128xf32>
    tpu.vector_store %arg4[%c0_100, %c9_101, %c0_102, %c0_103], %151 {strides = array<i32>} : memref<1x10x8x128xf32, #tpu.memory_space<vmem>>, vector<1x1x8x128xf32>,
    return
  }
  func.func @transform_0(%arg0: i32, %arg1: i32) -> (i32, i32, i32, i32) {
    %c0_i32 = arith.constant 0 : i32
    %c0_i32_0 = arith.constant 0 : i32
    %c0_i32_1 = arith.constant 0 : i32
    return %arg0, %c0_i32, %arg1, %c0_i32_0 : i32, i32, i32, i32
  }
  func.func @transform_1(%arg0: i32, %arg1: i32) -> (i32, i32, i32) {
    %c0_i32 = arith.constant 0 : i32
    %c0_i32_0 = arith.constant 0 : i32
    return %arg0, %arg1, %c0_i32 : i32, i32, i32
  }
  func.func @transform_2(%arg0: i32, %arg1: i32) -> (i32, i32, i32, i32) {
    %c0_i32 = arith.constant 0 : i32
    %c0_i32_0 = arith.constant 0 : i32
    %c0_i32_1 = arith.constant 0 : i32
    %c0_i32_2 = arith.constant 0 : i32
    return %arg0, %c0_i32, %c0_i32_0, %c0_i32_1 : i32, i32, i32, i32
  }
}

</mosaic_0001>

<bundles_post_ra>
// kernel: tpu_custom_call.1
= control target key start
LH: loop header
LB: loop body
LE: loop exit
PB: predicated region body
PF: predicated region fallthrough
CT: control target
= control target key end

     0   :  { %7 = vsyncpa [#allocation3], 0  ;;  %s992_s0 = inlined_call_operand.hbm [shape: f32[2,3,8,128], index: 0, kind: input, shape index: {}]   ;;  %s993_s1 = inlined_call_operand.hbm [shape: s32[2,8,128], index: 1, kind: input, shape index: {}]   ;;  %s994_s2 = inlined_call_operand.hbm [shape: f32[2,10,8,128], index: 2, kind: output, shape index: {}]  }
   0x1   :  { %9 = vsyncpa [#allocation3 + $0x1], 0 }
   0x2   :  { %10 = vsyncpa [#allocation6], 0 }
   0x3   :  { %12 = vsyncpa [#allocation6 + $0x1], 0 }
   0x4   :  { %13 = vsyncpa [#allocation4], 0 }
   0x5   :  { %15 = vsyncpa [#allocation4 + $0x1], 0  ;;  %s756_s9 = smov 0   ;;  %s758_s10 = smov 0  }
   0x6   :  { %s760_s11 = smov 0   ;;  %s762_s12 = smov 0  }
   0x7   :  { %s764_s13 = smov 0   ;;  %s766_s14 = smov 0  }
   0x8 LB: > { %s462_s15 = sadd.s32 4294967295, %s731_s14   ;;  %s463_s16 = sadd.s32 4294967294, %s731_s14   ;;  %s731_s14 = sphi %s766_s14, %s21_s14   ;;  %s727_s13 = sphi %s764_s13, %s1013_s13   ;;  %s723_s12 = sphi %s762_s12, %s1012_s12   ;;  %s719_s11 = sphi %s760_s11, %s1011_s11   ;;  %s715_s10 = sphi %s758_s10, %s1010_s10   ;;  %s711_s9 = sphi %s756_s9, %s1009_s9  }
   0x9   : > { %s33_s17 = sadd.s32 1, %s727_s13  ;;  %s42_s18 = sadd.s32 1, %s719_s11 }
   0xa   : > { %p35_p0 = scmp.ge.s32.totalorder %s33_s17, 2  ;;  %p49_p1 = scmp.ne.s32.totalorder %s719_s11, %s715_s10 }
   0xb   : > { %p50_p2 = scmp.eq.s32.totalorder %s731_s14, 0  ;;  %p55_p3 = scmp.ne.s32.totalorder %s715_s10, %s711_s9 }
   0xc   : > { %s1015_s17 = smov (%p35_p0, %s33_s17), 0  ;;  %p56_p5 = scmp.eq.s32.totalorder %s462_s15, 0 }
   0xd   : > { %p797_p4 = por %p50_p2, %p49_p1  ;;  %s37_s20 = ssub.s32 %s727_s13, %s1015_s17 }
   0xe   : > { %p107_p6 = scmp.eq.s32.totalorder %s462_s15, 1  ;;  %p40_p7 = scmp.eq.s32.totalorder %s37_s20, 0 }
   0xf   : > { %p803_p8 = por %p56_p5, %p55_p3  ;;  %p113_p10 = scmp.eq.s32.totalorder %s463_s16, 1 }
  0x10   : > { %p807_p9 = por %p107_p6, %p49_p1  ;;  %p520_p13 = scmp.lt.s32.totalorder %s731_s14, 2 }
  0x11   : > { %s998_s21 = scalar_select %p803_p8, 1, 0 }
  0x12   : > { %s999_s22 = scalar_select %p807_p9, 1, 0 }
  0x13   : > { %s812_s23 = scalar_select %p40_p7, %s719_s11, %s42_s18  }
  0x14   : > { %p814_p11 = por %p113_p10, %p55_p3  ;;  %s821_s25 = sand.u32 1, %s719_s11  }
  0x15   : > { %s498_s26 = smul.u32 24, %s821_s25  ;;  %p827_p0 = pnand %p520_p13, %p797_p4 }
  0x16   : > { %s1000_s24 = scalar_select %p814_p11, 1, 0 }
  0x17   : > { %s499_s27 = smul.u32 384, %s727_s13  ;;  %s137_s4 = scalar_lea.vmem [#allocation2], %s498_s26 }
  0x18   : > { %s145_s5 = sshll.u32 %s137_s4, 4  ;;  %s134_s6 = scalar_lea.sflag [#allocation3], %s821_s25  ;;  %s836_s5 = int_to_ptr.vmem [resolvable:$true] %s145_s5 }
  0x19   : > { %s834_s3 = scalar_lea.hbm %s992_s0, %s499_s27  ;;  %p587_p3 = pneg %p827_p0 }
  0x1a   : > { %s585_s7 = scalar_lea.hbm %s834_s3, 384  ;;  %s590_s16 = scalar_lea.hbm %s992_s0, 768 }
  0x1b   : > { %p586_p2 = scmp.ne.s32.totalorder %s834_s3, %s585_s7  ;;  %p591_p6 = scmp.lt.u32.totalorder %s834_s3, %s992_s0 }
  0x1c   : > { %p592_p7 = scmp.lt.u32.totalorder %s590_s16, %s585_s7  ;;  %p594_p13 = scmp.lt.u32.totalorder %s585_s7, %s834_s3 }
  0x1d   : > { %p588_p4 = pnand %p587_p3, %p586_p2 }
  0x1e   : > { %p593_p10 = por %p592_p7, %p591_p6 }
  0x1f   : > { %p589_p5 = pneg %p588_p4 }
  0x20   : > { %p595_p12 = por %p594_p13, %p593_p10 }
  0x22   : > { %p596_p1 = pnand %p595_p12, %p589_p5 }
  0x24   : > { %599 = shalt.err (!%p596_p1)
}
  0x25   : > { %s600_s20 = scalar_lea.vmem %s836_s5, 384  ;;  %s733_s26 = smov [#allocation2]  }
  0x26   : > { %p601_p2 = scmp.ne.s32.totalorder %s836_s5, %s600_s20  ;;  %s605_s27 = sshll.u32 %s733_s26, 4  ;;  %s606_s27 = int_to_ptr.vmem [resolvable:$false] %s605_s27 }
  0x27   : > { %s607_s29 = scalar_lea.vmem %s606_s27, 768  ;;  %p608_p9 = scmp.lt.s32.totalorder %s836_s5, %s606_s27 }
  0x28   : > { %p603_p4 = pnand %p601_p2, %p587_p3  ;;  %p609_p6 = scmp.lt.s32.totalorder %s607_s29, %s600_s20 }
  0x2a   : > { %p604_p11 = pneg %p603_p4  ;;  %p610_p7 = por %p609_p6, %p608_p9 }
  0x2c   : > { %p611_p10 = pnand %p610_p7, %p604_p11 }
  0x2e   : > { %614 = shalt.err (!%p611_p10)
}
  0x2f   : > { %s734_s30 = smov 128   ;;  %s735_s4 = smov 8  }
  0x30   : > { %512 = dma.hbm_to_vmem [thread:$0]  (!%p827_p0), %s834_s3, 384, %s836_s5, %s134_s6, %s734_s30, %s734_s30, %s735_s4  }
  0x31   : > { %p172_p12 = scmp.lt.s32.totalorder %s731_s14, 3  ;;  %s467_s7 = sshll.u32 %s821_s25, 3 }
  0x32   : > { %s468_s8 = sshll.u32 %s727_s13, 7  ;;  %p1002_p9 = scmp.ge.s32.totalorder %s731_s14, 1 }
  0x33   : > { %s879_s19 = scalar_lea.hbm %s993_s1, %s468_s8  ;;  %s159_s20 = scalar_lea.vmem [#allocation5], %s467_s7 }
  0x34   : > { %p872_p11 = pnand %p1002_p9, %p172_p12  ;;  %s167_s26 = sshll.u32 %s159_s20, 4  ;;  %s168_s26 = int_to_ptr.vmem [resolvable:$true] %s167_s26 }
  0x35   : > { %s156_s3 = scalar_lea.sflag [#allocation6], %s821_s25  ;;  %s615_s5 = scalar_lea.hbm %s879_s19, 128 }
  0x36   : > { %s1003_s15 = scalar_select %p872_p11, 1, 0 }
  0x37   : > { %p616_p1 = scmp.ne.s32.totalorder %s879_s19, %s615_s5  ;;  %s620_s29 = scalar_lea.hbm %s993_s1, 256 }
  0x38   : > { %p621_p2 = scmp.lt.u32.totalorder %s879_s19, %s993_s1  ;;  %p622_p4 = scmp.lt.u32.totalorder %s620_s29, %s615_s5 }
  0x39   : > { %p618_p5 = pnand %p616_p1, %p587_p3  ;;  %p624_p7 = scmp.lt.u32.totalorder %s615_s5, %s879_s19 }
  0x3a   : > { %p623_p6 = por %p622_p4, %p621_p2 }
  0x3b   : > { %p619_p13 = pneg %p618_p5 }
  0x3c   : > { %p625_p10 = por %p624_p7, %p623_p6 }
  0x3e   : > { %p626_p12 = pnand %p625_p10, %p619_p13 }
  0x40   : > { %629 = shalt.err (!%p626_p12)
}
  0x41   : > { %s630_s25 = scalar_lea.vmem %s168_s26, 128  ;;  %s736_s7 = smov [#allocation5]  }
  0x42   : > { %p631_p9 = scmp.ne.s32.totalorder %s168_s26, %s630_s25  ;;  %s635_s8 = sshll.u32 %s736_s7, 4  ;;  %s636_s8 = int_to_ptr.vmem [resolvable:$false] %s635_s8 }
  0x43   : > { %s637_s16 = scalar_lea.vmem %s636_s8, 256  ;;  %p638_p8 = scmp.lt.s32.totalorder %s168_s26, %s636_s8 }
  0x44   : > { %p633_p1 = pnand %p631_p9, %p587_p3  ;;  %p639_p11 = scmp.lt.s32.totalorder %s637_s16, %s630_s25 }
  0x46   : > { %p634_p5 = pneg %p633_p1  ;;  %p640_p2 = por %p639_p11, %p638_p8 }
  0x48   : > { %p641_p4 = pnand %p640_p2, %p634_p5 }
  0x4a   : > { %644 = shalt.err (!%p641_p4)
}
  0x4b   : > { %515 = dma.hbm_to_vmem [thread:$0]  (!%p827_p0), %s879_s19, 128, %s168_s26, %s156_s3  }
  0x4c   : > { %p1004_p13 = scmp.ne.s32.totalorder %s1003_s15, 0 }
  0x4d   : > { %s904_s18 = sand.u32 (!%p1004_p13), 1, %s715_s10   ;;  %p1005_p3 = scmp.ne.s32.totalorder (!%p1004_p13), %s998_s21, 0 }
  0x4e   : > { %176 = sbr.rel (%p1004_p13) target bundleno = 167 (0xa7), region = 28  ;;  %s179_s5 = scalar_lea.sflag (!%p1004_p13), [#allocation3], %s904_s18 }
  0x4f   : > { %s500_s20 = smul.u32 (!%p1004_p13), 24, %s904_s18 }
  0x51   : > { %s182_s6 = scalar_lea.vmem (!%p1004_p13), [#allocation2], %s500_s20 }
  0x55   : > { %698 = dma.done.wait (%p1005_p3), %s179_s5, 384  }
  0x56   : > { %700 = vsyncadd (%p1005_p3), %s179_s5, 4294966912  ;;  %s470_s28 = sshll.u32 %s904_s18, 3  ;;  %s188_s15 = scalar_lea.sflag [#allocation6], %s904_s18 }
  0x57   : > { %s191_s19 = scalar_lea.vmem [#allocation5], %s470_s28 }
  0x58   : > { %702 = dma.done.wait (%p1005_p3), %s188_s15, 128  }
  0x59   : > { %704 = vsyncadd (%p1005_p3), %s188_s15, 4294967168  ;;  %s501_s26 = smul.u32 80, %s904_s18  ;;  %v231_v0 = vld [vmem:[%s191_s19] sm:$0xff]  ;;  %v471_v2 = vld [vmem:[%s182_s6 + $0x8] sm:$0xff]  ;;  %v737_v5 = vmov 0.0   ;;  %s342_s25 = scalar_lea.sflag [#allocation4], %s904_s18 }
  0x5a   : > { %v232_v1 = vld [vmem:[%s182_s6] sm:$0xff]  ;;  %v472_v3 = vld [vmem:[%s182_s6 + $0x10] sm:$0xff]  ;;  %vm237_vm0 = vcmp.ge.s32.totalorder %v231_v0, 0  ;;  %vm238_vm1 = vcmp.eq.s32.totalorder %v231_v0, 0  ;;  %vm242_vm2 = vcmp.eq.s32.totalorder %v231_v0, 1  ;;  %vm246_vm3 = vcmp.eq.s32.totalorder %v231_v0, 2 }
  0x5b   : > { %vm239_vm4 = vmand %vm238_vm1, %vm237_vm0  ;;  %v250_v4 = vmax.f32 %v232_v1, %v471_v2  ;;  %s922_s21 = scalar_lea.vmem [#allocation7], %s501_s26  ;;  %v476_v22 = vsel %vm237_vm0, 1.0, %v737_v5  ;;  %s502_s3 = smul.u32 1280, %s723_s12 }
  0x5c   : > { %v473_v6 = vsel %vm239_vm4, 1.0, %v737_v5  ;;  %vm243_vm5 = vmand %vm242_vm2, %vm237_vm0  ;;  %s355_s27 = sshll.u32 %s922_s21, 4  ;;  %p1006_p0 = scmp.ne.s32.totalorder %s999_s22, 0  ;;  %s942_s27 = int_to_ptr.vmem [resolvable:$true] %s355_s27 }
  0x5d   : > { %v474_v7 = vsel %vm243_vm5, 1.0, %v737_v5  ;;  %vm247_vm6 = vmand %vm246_vm3, %vm237_vm0  ;;  %v251_v8 = vmax.f32 %v250_v4, %v472_v3  ;;  %482 = vst [vmem:[%s922_s21 + $0x38] sm:$0xff] %v473_v6  ;;  %v271_v34 = vmul.f32 0.02, %v473_v6  ;;  %s940_s4 = scalar_lea.hbm %s994_s2, %s502_s3  ;;  %s645_s7 = scalar_lea.vmem %s942_s27, 1280 }
  0x5e   : > { %v475_v9 = vsel %vm247_vm6, 1.0, %v737_v5  ;;  %488 = vst [vmem:[%s922_s21 + $0x40] sm:$0xff] %v474_v7  ;;  %v273_v35 = vmul.f32 12.0, %v474_v7  ;;  %p646_p8 = scmp.ne.s32.totalorder %s942_s27, %s645_s7  ;;  %s738_s12 = smov [#allocation7]  }
  0x5f   : > { %v252_v10 = vsub.f32 %v232_v1, %v251_v8  ;;  %v255_v11 = vsub.f32 %v471_v2, %v251_v8  ;;  %v258_v12 = vsub.f32 %v472_v3, %v251_v8  ;;  %494 = vst [vmem:[%s922_s21 + $0x48] sm:$0xff] %v475_v9  ;;  %v276_v39 = vmul.f32 18.0, %v475_v9  ;;  %s649_s8 = sshll.u32 %s738_s12, 4  ;;  %s650_s8 = int_to_ptr.vmem [resolvable:$false] %s649_s8 }
  0x60   : > { %v274_v38 = vadd.f32 %v273_v35, %v271_v34  ;;  %p647_p11 = pnand %p646_p8, %p1006_p0  ;;  %s651_s16 = scalar_lea.vmem %s650_s8, 2560 }
  0x61   : > { %v253_v13 = vmul.f32 1.442695, %v252_v10  ;;  %v256_v14 = vmul.f32 1.442695, %v255_v11  ;;  %v259_v15 = vmul.f32 1.442695, %v258_v12  ;;  %p652_p7 = scmp.lt.s32.totalorder %s942_s27, %s650_s8  ;;  %p653_p10 = scmp.lt.s32.totalorder %s651_s16, %s645_s7 }
  0x62   : > { %v277_v41 = vadd.f32 %v276_v39, %v274_v38  ;;  %p648_p6 = pneg %p647_p11 }
  0x63   : > { %575 = vpow2.f32 %v253_v13  ;;  %p654_p12 = por %p653_p10, %p652_p7 }
  0x64   : > { %577 = vpow2.f32 %v256_v14 }
  0x65   : > { %579 = vpow2.f32 %v259_v15  ;;  %p655_p9 = pnand %p654_p12, %p648_p6 }
  0x6d   : > { %v576_v16 = vpop.eup %575 }
  0x6e   : > { %v578_v17 = vpop.eup %577 }
  0x6f   : > { %v580_v18 = vpop.eup %579  ;;  %v261_v19 = vadd.f32 %v578_v17, %v576_v16 }
  0x71   : > { %v262_v20 = vadd.f32 %v580_v18, %v261_v19 }
  0x73   : > { %581 = vrcp.f32 %v262_v20 }
  0x7d   : > { %v582_v21 = vpop.eup %581 }
  0x7e   : > { %v265_v23 = vmul.f32 %v582_v21, %v576_v16  ;;  %v266_v24 = vmul.f32 %v582_v21, %v578_v17  ;;  %v267_v25 = vmul.f32 %v582_v21, %v580_v18 }
  0x80   : > { %v268_v26 = vmul.f32 %v473_v6, %v265_v23  ;;  %v269_v27 = vmul.f32 %v474_v7, %v266_v24  ;;  %v270_v28 = vmul.f32 %v475_v9, %v267_v25  ;;  %v298_v29 = vmul.f32 %v476_v22, %v265_v23 }
  0x81   : > { %v314_v30 = vmul.f32 %v476_v22, %v266_v24  ;;  %v330_v31 = vmul.f32 %v476_v22, %v267_v25 }
  0x82   : > { %v272_v32 = vadd.f32 %v269_v27, %v268_v26  ;;  %478 = vst [vmem:[%s922_s21 + $0x8] sm:$0xff] %v268_v26  ;;  %480 = vst [vmem:[%s922_s21 + $0x20] sm:$0xff] %v298_v29 }
  0x83   : > { %484 = vst [vmem:[%s922_s21 + $0x10] sm:$0xff] %v269_v27  ;;  %486 = vst [vmem:[%s922_s21 + $0x28] sm:$0xff] %v314_v30 }
  0x84   : > { %v275_v33 = vadd.f32 %v272_v32, %v270_v28  ;;  %490 = vst [vmem:[%s922_s21 + $0x18] sm:$0xff] %v270_v28  ;;  %492 = vst [vmem:[%s922_s21 + $0x30] sm:$0xff] %v330_v31 }
  0x86   : > { %v278_v36 = vsel %vm237_vm0, %v275_v33, 1.0 }
  0x87   : > { %583 = vlog2.f32 %v278_v36  ;;  %v282_v37 = vsub.f32 1.0, %v278_v36 }
  0x89   : > { %v283_v40 = vmul.f32 %v282_v37, %v282_v37 }
  0x8b   : > { %v284_v42 = vmul.f32 %v283_v40, %v282_v37 }
  0x8d   : > { %v285_v45 = vmul.f32 %v284_v42, %v277_v41 }
  0x91   : > { %v584_v43 = vpop.eup %583 }
  0x92   : > { %v280_v44 = vmul.f32 0.6931472, %v584_v43 }
  0x94   : > { %v281_v46 = vsub.f32 0.0, %v280_v44 }
  0x96   : > { %v286_v47 = vmul.f32 %v285_v45, %v281_v46 }
  0x98   : > { %292 = vst [vmem:[%s922_s21] sm:$0xff] %v286_v47 }
  0x99   : > { %658 = shalt.err (!%p655_p9)
}
  0x9a   : > { %s659_s20 = scalar_lea.hbm %s940_s4, 1280  ;;  %s663_s28 = scalar_lea.hbm %s994_s2, 2560 }
  0x9b   : > { %p660_p1 = scmp.ne.s32.totalorder %s940_s4, %s659_s20  ;;  %p664_p4 = scmp.lt.u32.totalorder %s940_s4, %s994_s2 }
  0x9c   : > { %p665_p13 = scmp.lt.u32.totalorder %s663_s28, %s659_s20  ;;  %p667_p8 = scmp.lt.u32.totalorder %s659_s20, %s940_s4 }
  0x9d   : > { %p661_p5 = pnand %p660_p1, %p1006_p0 }
  0x9e   : > { %p666_p3 = por %p665_p13, %p664_p4 }
  0x9f   : > { %p662_p2 = pneg %p661_p5 }
  0xa0   : > { %p668_p11 = por %p667_p8, %p666_p3 }
  0xa2   : > { %p669_p6 = pnand %p668_p11, %p662_p2 }
  0xa4   : > { %672 = shalt.err (!%p669_p6)
}
  0xa5   : > { %s739_s26 = smov 128   ;;  %s740_s21 = smov 8  }
  0xa6   : > { %507 = dma.vmem_to_hbm [thread:$0]  (%p1006_p0), %s942_s27, 1280, %s940_s4, %s342_s25, %s739_s26, %s739_s26, %s740_s21  }
  0xa7 PF: > { %s370_s3 = sand.u32 1, %s711_s9   ;;  %p1007_p7 = scmp.ne.s32.totalorder %s1000_s24, 0 }
  0xa8   : > { %p1008_p10 = scmp.ge.s32.totalorder %s731_s14, 2  ;;  %s371_s29 = scalar_lea.sflag [#allocation4], %s370_s3 }
  0xaa   : > { %p517_p12 = pnand %p1008_p10, %p1007_p7 }
  0xac   : > { %706 = dma.done.wait (!%p517_p12), %s371_s29, 1280  }
  0xad   : > { %708 = vsyncadd (!%p517_p12), %s371_s29, 4294966016  ;;  %s21_s14 = sadd.s32 1, %s731_s14   ;;  %s1009_s9 = smov %s715_s10 }
  0xae   : > { %p18_p9 = scmp.ge.s32.totalorder %s21_s14, 4   ;;  %s1010_s10 = smov %s719_s11 }
  0xaf   : > { %s1011_s11 = smov %s812_s23  ;;  %s1012_s12 = smov %s727_s13 }
  0xb0   : > { %s1013_s13 = smov %s1015_s17  ;;  %20 = sbr.rel (!%p18_p9) target bundleno = 8 (0x8), region = 101 }
  0xb7   :  { %376 = vsyncpa [#allocation3], 1 }
  0xb8   :  { %378 = vsyncpa [#allocation3 + $0x1], 1 }
  0xb9   :  { %379 = vsyncpa [#allocation6], 1 }
  0xba   :  { %381 = vsyncpa [#allocation6 + $0x1], 1 }
  0xbb   :  { %382 = vsyncpa [#allocation4], 1 }
  0xbc   :  { %384 = vsyncpa [#allocation4 + $0x1], 1 }

</bundles_post_ra>
